<compile_context>
chip_gen: v7x
topology: tpu7x:2x2x1
jax: 0.10.0
libtpu: 0.0.40
codegen_flags: <defaults>
</compile_context>

<pallas_src>
import functools

import jax
import jax.numpy as jnp
from jax import lax
from jax.experimental import pallas as pl
from jax.experimental.pallas import tpu as pltpu


# --------------------------------------------------------------------------- #
# Kernels
# --------------------------------------------------------------------------- #
def _conv_lrelu_kernel_s1(x_ref, w_ref, b_ref, o_ref, *, kh, h_out, slope):
    """stride == 1 path (one grid step = one batch element).

    x_ref: (1, Hp, Wp*Cin)            width-folded, zero-padded input
    w_ref: (KH, Wp*Cin, W_out*Cout)   folded block-sparse weights
    b_ref: (1, W_out*Cout)            bias tiled over W_out
    o_ref: (1, H_out, W_out*Cout)     lane-dense output slab
    """
    # KH lane-dense matmuls, accumulated in f32.  No reshapes, no concat.
    acc = jnp.dot(x_ref[0, 0:h_out, :], w_ref[0],
                  preferred_element_type=jnp.float32)
    for ky in range(1, kh):
        band = x_ref[0, ky:ky + h_out, :]                 # (H_out, Wp*Cin)
        acc = acc + jnp.dot(band, w_ref[ky],
                            preferred_element_type=jnp.float32)

    y = acc + b_ref[0]
    y = jnp.where(y >= 0, y, slope * y)                   # LeakyReLU(slope)
    o_ref[0] = y.astype(o_ref.dtype)                      # lane-dense store


def _conv_lrelu_kernel_strided(g_ref, x_ref, w_ref, b_ref, o_ref, *,
                               kh, h_out, slope):
    """stride > 1 path: rows are gathered with one selection matmul.

    g_ref: (KH*H_out, Hp)  row-selection matrix, g[ky*H_out+y, y*stride+ky]=1
    (other refs as in the stride==1 kernel)
    """
    # bands[ky*H_out + y, :] == x_fold[y*stride + ky, :]
    bands = jnp.dot(g_ref[...], x_ref[0],
                    preferred_element_type=jnp.float32)   # (KH*H_out, Wp*Cin)

    acc = jnp.dot(bands[0:h_out, :], w_ref[0],
                  preferred_element_type=jnp.float32)
    for ky in range(1, kh):
        band = bands[ky * h_out:(ky + 1) * h_out, :]      # aligned static slice
        acc = acc + jnp.dot(band, w_ref[ky],
                            preferred_element_type=jnp.float32)

    y = acc + b_ref[0]
    y = jnp.where(y >= 0, y, slope * y)
    o_ref[0] = y.astype(o_ref.dtype)


# --------------------------------------------------------------------------- #
# Wrapper-side constant folding (done once per layer)
# --------------------------------------------------------------------------- #
def _fold_weights(w_oihw, *, w_out, wp, stride, dtype):
    """Fold the (KW, column-stride, Cin->Cout) conv structure into one
    (Wp*Cin, W_out*Cout) block-sparse matrix per KH row tap, so that
      out[y, x*Cout+co] = sum_ky (row_band_ky @ W_fold[ky])[y, x*Cout+co].
    """
    cout, cin, kh, kw = w_oihw.shape
    w_hwio = jnp.transpose(w_oihw, (2, 3, 1, 0))                  # (KH, KW, Cin, Cout)
    x_idx = jnp.arange(w_out)[:, None, None]
    k_idx = jnp.arange(kw)[None, :, None]
    p_idx = jnp.arange(wp)[None, None, :]
    sel = (p_idx == x_idx * stride + k_idx).astype(dtype)         # (W_out, KW, Wp)
    # wf[ky, p, ci, x, co] = sum_kx sel[x, kx, p] * w[ky, kx, ci, co]
    wf = jnp.einsum('xkp,ykio->ypixo', sel, w_hwio)
    return wf.reshape(kh, wp * cin, w_out * cout)


def _row_gather_matrix(kh, h_out, hp, stride, dtype):
    r = jnp.arange(kh * h_out)
    tgt = (r % h_out) * stride + (r // h_out)                     # row y*stride+ky
    return (jnp.arange(hp)[None, :] == tgt[:, None]).astype(dtype)  # (KH*H_out, Hp)


# --------------------------------------------------------------------------- #
# Public entry point (NCHW in / NCHW out, matching the PyTorch module)
# --------------------------------------------------------------------------- #
def conv_lrelu_block(x_nchw, w_oihw, bias, *, stride, padding, slope=0.3):
    n, cin, h, w = x_nchw.shape
    cout, cin_w, kh, kw = w_oihw.shape
    assert cin == cin_w, "channel mismatch"

    h_out = (h + 2 * padding - kh) // stride + 1
    w_out = (w + 2 * padding - kw) // stride + 1
    hp, wp = h + 2 * padding, w + 2 * padding
    dt = x_nchw.dtype

    # Glue: NCHW -> width-folded, zero-padded NHWC slab (N, Hp, Wp*Cin).
    # TODO(synk): in a full network keep activations in this folded NHWC layout
    # between layers instead of transposing NCHW<->NHWC per layer.
    x_nhwc = jnp.transpose(x_nchw, (0, 2, 3, 1))
    x_pad = jnp.pad(x_nhwc, ((0, 0), (padding, padding), (padding, padding), (0, 0)))
    x_fold = x_pad.reshape(n, hp, wp * cin)

    w_fold = _fold_weights(w_oihw, w_out=w_out, wp=wp, stride=stride, dtype=dt)
    b_fold = jnp.tile(bias.astype(dt), w_out).reshape(1, w_out * cout)

    common_specs = [
        pl.BlockSpec((1, hp, wp * cin), lambda i: (i, 0, 0)),
        pl.BlockSpec((kh, wp * cin, w_out * cout), lambda i: (0, 0, 0)),
        pl.BlockSpec((1, w_out * cout), lambda i: (0, 0)),
    ]
    out_spec = pl.BlockSpec((1, h_out, w_out * cout), lambda i: (i, 0, 0))

    if stride == 1:
        kernel = functools.partial(_conv_lrelu_kernel_s1,
                                   kh=kh, h_out=h_out, slope=slope)
        in_specs = common_specs
        args = (x_fold, w_fold, b_fold)
    else:
        g = _row_gather_matrix(kh, h_out, hp, stride, dt)
        kernel = functools.partial(_conv_lrelu_kernel_strided,
                                   kh=kh, h_out=h_out, slope=slope)
        in_specs = [pl.BlockSpec((kh * h_out, hp), lambda i: (0, 0))] + common_specs
        args = (g, x_fold, w_fold, b_fold)

    out_fold = pl.pallas_call(
        kernel,
        out_shape=jax.ShapeDtypeStruct((n, h_out, w_out * cout), dt),
        grid_spec=pltpu.PrefetchScalarGridSpec(
            num_scalar_prefetch=0,
            grid=(n,),
            in_specs=in_specs,
            out_specs=out_spec,
        ),
        compiler_params=pltpu.CompilerParams(dimension_semantics=("parallel",)),
    )(*args)

    out_nhwc = out_fold.reshape(n, h_out, w_out, cout)     # free unfold in wrapper
    return jnp.transpose(out_nhwc, (0, 3, 1, 2))           # back to NCHW


# --------------------------------------------------------------------------- #
# Reference + self-test
# --------------------------------------------------------------------------- #
def _reference(x_nchw, w_oihw, bias, *, stride, padding, slope):
    y = lax.conv_general_dilated(
        x_nchw, w_oihw,
        window_strides=(stride, stride),
        padding=[(padding, padding), (padding, padding)],
        dimension_numbers=("NCHW", "OIHW", "NCHW"))
    y = y + bias[None, :, None, None]
    return jnp.where(y >= 0, y, slope * y)


if __name__ == "__main__":
    # ConvLreluBlock(inf=4, outf=8, kernel=3, stride={1,2}, padding=1, slope=0.3)
    N, inf, H, W = 2, 4, 16, 16
    slope = 0.3

    key = jax.random.PRNGKey(0)
    kx, kw_, kb = jax.random.split(key, 3)
    x = jax.random.normal(kx, (N, inf, H, W), dtype=jnp.float32)

    for (outf, ksz, stride, padding) in [(8, 3, 1, 1), (8, 3, 2, 1)]:
        # PyTorch Conv2d default init conventions (uniform(+-1/sqrt(fan_in))).
        fan_in = inf * ksz * ksz
        bound = 1.0 / (float(fan_in) ** 0.5)
        weight = jax.random.uniform(kw_, (outf, inf, ksz, ksz),
                                    minval=-bound, maxval=bound, dtype=jnp.float32)
        bias = jax.random.uniform(kb, (outf,),
                                  minval=-bound, maxval=bound, dtype=jnp.float32)

        out = conv_lrelu_block(x, weight, bias,
                               stride=stride, padding=padding, slope=slope)
        out = jax.block_until_ready(out)

        ref = _reference(x, weight, bias,
                         stride=stride, padding=padding, slope=slope)
        h_out = (H + 2 * padding - ksz) // stride + 1
        w_out = (W + 2 * padding - ksz) // stride + 1
        assert out.shape == (N, outf, h_out, w_out), out.shape
        max_err = float(jnp.max(jnp.abs(out - ref)))
        assert jnp.allclose(out, ref, atol=1e-4, rtol=1e-4), max_err

    print("KERNEL_OK")
</pallas_src>

<mosaic_0001>
module attributes {stable_mosaic.version = 11 : i64} {
  func.func @_conv_lrelu_kernel_s1(%arg0: i32, %arg1: memref<1x18x72xf32, #tpu.memory_space<vmem>>, %arg2: memref<3x72x128xf32, #tpu.memory_space<vmem>>, %arg3: memref<1x128xf32, #tpu.memory_space<vmem>>, %arg4: memref<1x16x128xf32, #tpu.memory_space<vmem>>) attributes {dimension_semantics = [#tpu.dimension_semantics<parallel>], iteration_bounds = array<i64: 2>, scalar_prefetch = 0 : i64, scratch_operands = 0 : i64, tpu.core_type = #tpu.core_type<tc>, window_params = [{transform_indices = @transform_0, window_bounds = array<i64: 1, 18, 72>}, {pipeline_mode = #tpu.pipeline_mode<synchronous>, transform_indices = @transform_1, window_bounds = array<i64: 3, 72, 128>}, {pipeline_mode = #tpu.pipeline_mode<synchronous>, transform_indices = @transform_2, window_bounds = array<i64: 1, 128>}, {transform_indices = @transform_3, window_bounds = array<i64: 1, 16, 128>}]} {
    %c0 = arith.constant 0 : index
    %c0_0 = arith.constant 0 : index
    %c0_1 = arith.constant 0 : index
    %0 = vector.load %arg1[%c0, %c0_0, %c0_1] : memref<1x18x72xf32, #tpu.memory_space<vmem>>, vector<1x16x72xf32>
    %1 = vector.shape_cast %0 : vector<1x16x72xf32> to vector<16x72xf32>
    %c0_2 = arith.constant 0 : index
    %c0_3 = arith.constant 0 : index
    %c0_4 = arith.constant 0 : index
    %2 = vector.load %arg2[%c0_2, %c0_3, %c0_4] : memref<3x72x128xf32, #tpu.memory_space<vmem>>, vector<1x72x128xf32>
    %3 = vector.shape_cast %2 : vector<1x72x128xf32> to vector<72x128xf32>
    %cst = arith.constant dense<0.000000e+00> : vector<16x128xf32>
    %4 = tpu.matmul %1, %3, %cst {dimension_numbers = #tpu.dot_dimension_numbers<[1], [0], [0], [1], [0, 0, 1, 1], [], []>} : vector<16x72xf32>, vector<72x128xf32>, vector<16x128xf32> -> vector<16x128xf32>
    %c0_5 = arith.constant 0 : index
    %c1 = arith.constant 1 : index
    %c0_6 = arith.constant 0 : index
    %5 = vector.load %arg1[%c0_5, %c1, %c0_6] : memref<1x18x72xf32, #tpu.memory_space<vmem>>, vector<1x16x72xf32>
    %6 = vector.shape_cast %5 : vector<1x16x72xf32> to vector<16x72xf32>
    %c1_7 = arith.constant 1 : index
    %c0_8 = arith.constant 0 : index
    %c0_9 = arith.constant 0 : index
    %7 = vector.load %arg2[%c1_7, %c0_8, %c0_9] : memref<3x72x128xf32, #tpu.memory_space<vmem>>, vector<1x72x128xf32>
    %8 = vector.shape_cast %7 : vector<1x72x128xf32> to vector<72x128xf32>
    %cst_10 = arith.constant dense<0.000000e+00> : vector<16x128xf32>
    %9 = tpu.matmul %6, %8, %cst_10 {dimension_numbers = #tpu.dot_dimension_numbers<[1], [0], [0], [1], [0, 0, 1, 1], [], []>} : vector<16x72xf32>, vector<72x128xf32>, vector<16x128xf32> -> vector<16x128xf32>
    %10 = arith.addf %4, %9 : vector<16x128xf32>
    %c0_11 = arith.constant 0 : index
    %c2 = arith.constant 2 : index
    %c0_12 = arith.constant 0 : index
    %11 = vector.load %arg1[%c0_11, %c2, %c0_12] : memref<1x18x72xf32, #tpu.memory_space<vmem>>, vector<1x16x72xf32>
    %12 = vector.shape_cast %11 : vector<1x16x72xf32> to vector<16x72xf32>
    %c2_13 = arith.constant 2 : index
    %c0_14 = arith.constant 0 : index
    %c0_15 = arith.constant 0 : index
    %13 = vector.load %arg2[%c2_13, %c0_14, %c0_15] : memref<3x72x128xf32, #tpu.memory_space<vmem>>, vector<1x72x128xf32>
    %14 = vector.shape_cast %13 : vector<1x72x128xf32> to vector<72x128xf32>
    %cst_16 = arith.constant dense<0.000000e+00> : vector<16x128xf32>
    %15 = tpu.matmul %12, %14, %cst_16 {dimension_numbers = #tpu.dot_dimension_numbers<[1], [0], [0], [1], [0, 0, 1, 1], [], []>} : vector<16x72xf32>, vector<72x128xf32>, vector<16x128xf32> -> vector<16x128xf32>
    %16 = arith.addf %10, %15 : vector<16x128xf32>
    %c0_17 = arith.constant 0 : index
    %c0_18 = arith.constant 0 : index
    %17 = vector.load %arg3[%c0_17, %c0_18] : memref<1x128xf32, #tpu.memory_space<vmem>>, vector<1x128xf32>
    %18 = vector.shape_cast %17 : vector<1x128xf32> to vector<128xf32>
    %19 = vector.shape_cast %18 : vector<128xf32> to vector<1x128xf32>
    %20 = vector.broadcast %19 : vector<1x128xf32> to vector<16x128xf32>
    %21 = arith.addf %16, %20 : vector<16x128xf32>
    %cst_19 = arith.constant 0.000000e+00 : f32
    %22 = vector.broadcast %cst_19 : f32 to vector<16x128xf32>
    %23 = arith.cmpf oge, %21, %22 : vector<16x128xf32>
    %cst_20 = arith.constant 3.000000e-01 : f32
    %24 = vector.broadcast %cst_20 : f32 to vector<16x128xf32>
    %25 = arith.mulf %24, %21 : vector<16x128xf32>
    %26 = arith.select %23, %21, %25 : vector<16x128xi1>, vector<16x128xf32>
    %c0_21 = arith.constant 0 : index
    %c0_22 = arith.constant 0 : index
    %c0_23 = arith.constant 0 : index
    %27 = vector.load %arg4[%c0_21, %c0_22, %c0_23] : memref<1x16x128xf32, #tpu.memory_space<vmem>>, vector<1x16x128xf32>
    %28 = vector.shape_cast %27 : vector<1x16x128xf32> to vector<16x128xf32>
    %29 = vector.shape_cast %26 : vector<16x128xf32> to vector<1x16x128xf32>
    tpu.vector_store %arg4[%c0_21, %c0_22, %c0_23], %29 {strides = array<i32>} : memref<1x16x128xf32, #tpu.memory_space<vmem>>, vector<1x16x128xf32>,
    return
  }
  func.func @transform_0(%arg0: i32) -> (i32, i32, i32) {
    %c0_i32 = arith.constant 0 : i32
    %c0_i32_0 = arith.constant 0 : i32
    %c0_i32_1 = arith.constant 0 : i32
    return %arg0, %c0_i32, %c0_i32_0 : i32, i32, i32
  }
  func.func @transform_1(%arg0: i32) -> (i32, i32, i32) {
    %c0_i32 = arith.constant 0 : i32
    %c0_i32_0 = arith.constant 0 : i32
    %c0_i32_1 = arith.constant 0 : i32
    %c0_i32_2 = arith.constant 0 : i32
    return %c0_i32, %c0_i32_0, %c0_i32_1 : i32, i32, i32
  }
  func.func @transform_2(%arg0: i32) -> (i32, i32) {
    %c0_i32 = arith.constant 0 : i32
    %c0_i32_0 = arith.constant 0 : i32
    %c0_i32_1 = arith.constant 0 : i32
    return %c0_i32, %c0_i32_0 : i32, i32
  }
  func.func @transform_3(%arg0: i32) -> (i32, i32, i32) {
    %c0_i32 = arith.constant 0 : i32
    %c0_i32_0 = arith.constant 0 : i32
    %c0_i32_1 = arith.constant 0 : i32
    return %arg0, %c0_i32, %c0_i32_0 : i32, i32, i32
  }
}

</mosaic_0001>

<bundles_post_ra>
// kernel: tpu_custom_call.1
= control target key start
LH: loop header
LB: loop body
LE: loop exit
PB: predicated region body
PF: predicated region fallthrough
CT: control target
= control target key end

     0   :  { %8 = vsyncpa [#allocation3], 0  ;;  %s1071_s0 = inlined_call_operand.vmem [shape: f32[2,18,72], index: 0, kind: input, shape index: {}]   ;;  %s1072_s1 = inlined_call_operand.hbm [shape: f32[3,72,128], index: 1, kind: input, shape index: {}]   ;;  %s1073_s2 = inlined_call_operand.vmem [shape: f32[1,128], index: 2, kind: input, shape index: {}]   ;;  %s1074_s3 = inlined_call_operand.hbm [shape: f32[2,16,128], index: 3, kind: output, shape index: {}]  }
   0x1   :  { %9 = vsyncpa [#allocation4], 0 }
   0x2   :  { %11 = vsyncpa [#allocation4 + $0x1], 0  ;;  %s916_s12 = smov 0   ;;  %s918_s13 = smov 0  }
   0x3   :  { %s920_s14 = smov 0   ;;  %s922_s15 = smov 0  }
   0x4 LB: > { %s937_s16 = sadd.s32 4294967295, %s888_s15   ;;  %s570_s17 = sadd.s32 4294967294, %s888_s15   ;;  %s888_s15 = sphi %s922_s15, %s1090_s15   ;;  %s884_s14 = sphi %s920_s14, %s1089_s14   ;;  %s880_s13 = sphi %s918_s13, %s1088_s13   ;;  %s876_s12 = sphi %s916_s12, %s1087_s12  }
   0x5   : > { %s941_s18 = sadd.s32 1, %s888_s15   ;;  %s92_s19 = sadd.s32 1, %s884_s14 }
   0x6   : > { %s89_s20 = ssub.s32 %s888_s15, %s941_s18  ;;  %p102_p0 = scmp.ne.s32.totalorder %s884_s14, %s880_s13 }
   0x7   : > { %p90_p1 = scmp.eq.s32.totalorder %s89_s20, 0  ;;  %p103_p2 = scmp.eq.s32.totalorder %s937_s16, 1 }
   0x8   : > { %p108_p3 = scmp.ne.s32.totalorder %s880_s13, %s876_s12  ;;  %p109_p4 = scmp.eq.s32.totalorder %s570_s17, 1 }
   0x9   : > { %s952_s21 = scalar_select %p90_p1, %s884_s14, %s92_s19  }
   0xa   : > { %p954_p5 = por %p103_p2, %p102_p0  ;;  %p958_p6 = por %p109_p4, %p108_p3 }
   0xb   : > { %p571_p7 = scmp.ge.s32.totalorder %s888_s15, 1  ;;  %p116_p8 = scmp.lt.s32.totalorder %s888_s15, 3 }
   0xc   : > { %s1078_s22 = scalar_select %p954_p5, 1, 0 }
   0xd   : > { %s1079_s23 = scalar_select %p958_p6, 1, 0 }
   0xe   : > { %p1075_p9 = scmp.eq.s32.totalorder %s937_s16, 0  ;;  %p965_p10 = pnand %p571_p7, %p116_p8 }
   0xf   : > { %s890_s25 = smov [#allocation2]   ;;  %s794_s30 = scalar_lea.hbm %s1072_s1, 3456 }
  0x10   : > { %s1080_s24 = scalar_select %p965_p10, 1, 0 }
  0x11   : > { %s128_s26 = sshll.u32 %s890_s25, 4  ;;  %p746_p11 = pneg %p965_p10  ;;  %s129_s26 = int_to_ptr.vmem [resolvable:$true] %s128_s26 }
  0x12   : > { %p795_p13 = scmp.ne.s32.totalorder %s1072_s1, %s794_s30  ;;  %p801_p3 = scmp.lt.u32.totalorder %s794_s30, %s1072_s1 }
  0x13   : > { %p973_p12 = pnand %p1075_p9, %p746_p11 }
  0x15   : > { %p796_p0 = pneg %p973_p12 }
  0x17   : > { %p797_p1 = pnand %p796_p0, %p795_p13 }
  0x19   : > { %p798_p2 = pneg %p797_p1 }
  0x1b   : > { %p803_p4 = pnand %p801_p3, %p798_p2 }
  0x1d   : > { %806 = shalt.err (!%p803_p4)
}
  0x1e   : > { %s807_s8 = scalar_lea.vmem %s129_s26, 3456  ;;  %p815_p9 = scmp.lt.s32.totalorder %s129_s26, %s129_s26 }
  0x1f   : > { %p808_p7 = scmp.ne.s32.totalorder %s129_s26, %s807_s8  ;;  %p816_p6 = scmp.lt.s32.totalorder %s807_s8, %s807_s8 }
  0x21   : > { %p810_p8 = pnand %p808_p7, %p796_p0  ;;  %p817_p5 = por %p816_p6, %p815_p9 }
  0x23   : > { %p811_p11 = pneg %p810_p8 }
  0x25   : > { %p818_p10 = pnand %p817_p5, %p811_p11 }
  0x27   : > { %821 = shalt.err (!%p818_p10)
}
  0x28   : > { %s891_s9 = smov 128   ;;  %s892_s10 = smov 8  }
  0x29   : > { %749 = dma.hbm_to_vmem [thread:$0]  (!%p973_p12), %s1072_s1, 3456, %s129_s26, [#allocation3], %s891_s9, %s891_s9, %s892_s10  }
  0x2a   : > { %p1082_p13 = scmp.ne.s32.totalorder %s1080_s24, 0 }
  0x2b   : > { %p1083_p1 = scmp.eq.s32.totalorder (!%p1082_p13), %s937_s16, 0 }
  0x2c   : > { %155 = sbr.rel (%p1082_p13) target bundleno = 326 (0x146), region = 32 }
  0x33   : > { %867 = dma.done.wait (%p1083_p1), [#allocation3], 3456   ;;  %p1084_p0 = pmov %p1083_p1 }
  0x34   : > { %p179_p5 = scmp.lt.s32.totalorder %s937_s16, 1  ;;  %v186_v0 = vld [vmem:[#allocation2] sm:$0xff]  ;;  %v187_v1 = vld [vmem:[#allocation2 + $0x8] sm:$0xff]  ;;  %v188_v2 = vld [vmem:[#allocation2 + $0x10] sm:$0xff]  ;;  %vm207_vm0 = vcmask 588800   ;;  %s176_s24 = sand.u32 1, %s880_s13  }
  0x35   : > { %869 = vsyncadd (%p1084_p0), [#allocation3], 4294963840  ;;  %v703_v3 = vpack.c.bf16 %v187_v1, %v186_v0  ;;  %v189_v4 = vld [vmem:[#allocation2 + $0x18] sm:$0xff]  ;;  %v190_v6 = vld [vmem:[#allocation2 + $0x20] sm:$0xff]  ;;  %s576_s28 = sshll.u32 %s176_s24, 4  ;;  %s590_s6 = sshll.u32 %s937_s16, 8 }
  0x36   : > { %s180_s19 = scalar_select %p179_p5, %s937_s16, 1  ;;  %v707_v5 = vpack.c.bf16 %v189_v4, %v188_v2  ;;  %v191_v7 = vld [vmem:[#allocation2 + $0x28] sm:$0xff]  ;;  %v199_v9 = vld [vmem:[#allocation2 + $0x50] sm:$0xff]  ;;  %v200_v14 = vld [vmem:[#allocation2 + $0x58] sm:$0xff] }
  0x37   : > { %704 = vmatprep.subr.bf16.mxu0 %v703_v3  ;;  %v198_v8 = vld [vmem:[#allocation2 + $0x48] sm:$0xff]  ;;  %v711_v12 = vpack.c.bf16 %v191_v7, %v190_v6  ;;  %v192_v13 = vld [vmem:[#allocation2 + $0x30] sm:$0xff]  ;;  %v201_v15 = vld [vmem:[#allocation2 + $0x60] sm:$0xff]  ;;  %s178_s4 = scalar_lea.vmem [#allocation5], %s576_s28  ;;  %s1028_s9 = scalar_lea.hbm %s1074_s3, %s590_s6 }
  0x38   : > { %s739_s20 = smul.u32 24, %s180_s19  ;;  %706 = vmatpush3.bf16.msra.mxu0 %v703_v3  ;;  %v687_v11 = vpack.c.bf16 %v199_v9, %v198_v8  ;;  %v193_v16 = vld [vmem:[#allocation2 + $0x38] sm:$0xff]  ;;  %v691_v17 = vpack.c.bf16 %v201_v15, %v200_v14  ;;  %v202_v18 = vld [vmem:[#allocation2 + $0x68] sm:$0xff]  ;;  %v203_v19 = vld [vmem:[#allocation2 + $0x70] sm:$0xff]  ;;  %s496_s5 = sshll.u32 %s178_s4, 4  ;;  %s1023_s5 = int_to_ptr.vmem [resolvable:$true] %s496_s5 }
  0x39   : > { %708 = vmatprep.subr.bf16.mxu0 %v707_v5  ;;  %v695_v20 = vpack.c.bf16 %v203_v19, %v202_v18  ;;  %v715_v21 = vpack.c.bf16 %v193_v16, %v192_v13  ;;  %v204_v22 = vld [vmem:[#allocation2 + $0x78] sm:$0xff]  ;;  %v205_v23 = vld [vmem:[#allocation2 + $0x80] sm:$0xff]  ;;  %v373_v27 = vld [vmem:[#allocation2 + $0x90] sm:$0xff]  ;;  %s1030_s16 = scalar_lea.sflag [#allocation4], %s176_s24  ;;  %s822_s10 = scalar_lea.vmem %s1023_s5, 256 }
  0x3a   : > { %s1004_s26 = scalar_lea.vmem %s1071_s0, %s739_s20  ;;  %688 = vmatprep.subr.bf16.mxu1 %v687_v11  ;;  %v699_v25 = vpack.c.bf16 %v205_v23, %v204_v22  ;;  %v194_v26 = vld [vmem:[#allocation2 + $0x40] sm:$0xff]  ;;  %v374_v28 = vld [vmem:[#allocation2 + $0x98] sm:$0xff]  ;;  %v376_v30 = vld [vmem:[#allocation2 + $0xa8] sm:$0xff]  ;;  %p823_p6 = scmp.ne.s32.totalorder %s1023_s5, %s822_s10 }
  0x3b   : > { %v184_v10 = vld [vmem:[%s1004_s26] sm:$0xff]  ;;  %690 = vmatpush3.bf16.msra.mxu1 %v687_v11  ;;  %v375_v29 = vld [vmem:[#allocation2 + $0xa0] sm:$0xff]  ;;  %v719_v31 = vpack.c.bf16 %v374_v28, %v373_v27  ;;  %v206_v32 = vld [vmem:[#allocation2 + $0x88] sm:$0xff]  ;;  %p1085_p9 = scmp.ne.s32.totalorder %s1078_s22, 0  ;;  %s893_s11 = smov [#allocation5]  }
  0x3c   : > { %663 = vmatprep.mubr.msk.f32.mxu0 %vm207_vm0, %v184_v10  ;;  %710 = vmatpush3.bf16.msra.mxu0 %v707_v5  ;;  %v195_v24 = vld [vmem:[%s1004_s26 + $0x1] sm:$0xff]  ;;  %v723_v34 = vpack.c.bf16 %v376_v30, %v375_v29  ;;  %v196_v38 = vld [vmem:[%s1004_s26 + $0x9] sm:$0xff]  ;;  %v380_v41 = vld [vmem:[#allocation2 + $0xc8] sm:$0xff]  ;;  %s826_s17 = sshll.u32 %s893_s11, 4  ;;  %s827_s17 = int_to_ptr.vmem [resolvable:$false] %s826_s17 }
  0x3d   : > { %692 = vmatprep.subr.bf16.mxu1 %v691_v17  ;;  %712 = vmatprep.subr.bf16.mxu0 %v711_v12  ;;  %v185_v33 = vld [vmem:[%s1004_s26 + $0x8] sm:$0xff]  ;;  %v377_v36 = vld [vmem:[#allocation2 + $0xb0] sm:$0xff]  ;;  %v379_v40 = vld [vmem:[#allocation2 + $0xc0] sm:$0xff]  ;;  %p824_p10 = pnand %p823_p6, %p1085_p9  ;;  %s828_s19 = scalar_lea.vmem %s827_s17, 512 }
  0x3e   : > { %642 = vmatprep.mubr.msk.f32.mxu1 %vm207_vm0, %v195_v24  ;;  %v370_v35 = vld [vmem:[%s1004_s26 + $0x2] sm:$0xff]  ;;  %v731_v42 = vpack.c.bf16 %v380_v41, %v379_v40  ;;  %v371_v44 = vld [vmem:[%s1004_s26 + $0xa] sm:$0xff]  ;;  %v584_v48 = vld [vmem:[%s1073_s2] ss:$0 sm:$0xff]  ;;  %p829_p2 = scmp.lt.s32.totalorder %s1023_s5, %s827_s17  ;;  %p830_p3 = scmp.lt.s32.totalorder %s828_s19, %s822_s10 }
  0x3f   : > { %694 = vmatpush3.bf16.msra.mxu1 %v691_v17  ;;  %v378_v37 = vld [vmem:[#allocation2 + $0xb8] sm:$0xff]  ;;  %v381_v43 = vld [vmem:[#allocation2 + $0xd0] sm:$0xff]  ;;  %p825_p12 = pneg %p824_p10 }
  0x40   : > { %714 = vmatpush3.bf16.msra.mxu0 %v711_v12  ;;  %696 = vmatprep.subr.bf16.mxu1 %v695_v20  ;;  %v727_v39 = vpack.c.bf16 %v378_v37, %v377_v36  ;;  %p831_p4 = por %p830_p3, %p829_p2 }
  0x41   : > { %716 = vmatprep.subr.bf16.mxu0 %v715_v21 }
  0x42   : > { %p832_p7 = pnand %p831_p4, %p825_p12 }
  0x43   : > { %698 = vmatpush3.bf16.msra.mxu1 %v695_v20 }
  0x44   : > { %718 = vmatpush3.bf16.msra.mxu0 %v715_v21  ;;  %700 = vmatprep.subr.bf16.mxu1 %v699_v25 }
  0x45   : > { %661 = vmatprep.subr.mxu0 %v194_v26 }
  0x47   : > { %702 = vmatpush3.bf16.msra.mxu1 %v699_v25 }
  0x48   : > { %662 = vmatpush3.msra.mxu0 %v194_v26  ;;  %640 = vmatprep.subr.mxu1 %v206_v32 }
  0x49   : > { %720 = vmatprep.subr.bf16.mxu0 %v719_v31  ;;  %664 = vmatmul.mubr.msk.f32.vlgmr.msra.gmra.mrb[0].mxu0 %vm207_vm0, %v185_v33 }
  0x4a   : > { %722 = vmatpush3.bf16.msra.mxu0 %v719_v31  ;;  %684 = vmatprep.mubr.msk.f32.mxu0 %vm207_vm0, %v370_v35 }
  0x4b   : > { %724 = vmatprep.subr.bf16.mxu0 %v723_v34  ;;  %641 = vmatpush3.msra.mxu1 %v206_v32 }
  0x4c   : > { %643 = vmatmul.mubr.msk.f32.vlgmr.msra.gmra.mrb[0].mxu1 %vm207_vm0, %v196_v38 }
  0x4e   : > { %726 = vmatpush3.bf16.msra.mxu0 %v723_v34 }
  0x4f   : > { %728 = vmatprep.subr.bf16.mxu0 %v727_v39 }
  0x52   : > { %730 = vmatpush3.bf16.msra.mxu0 %v727_v39 }
  0x53   : > { %732 = vmatprep.subr.bf16.mxu0 %v731_v42 }
  0x56   : > { %734 = vmatpush3.bf16.msra.mxu0 %v731_v42 }
  0x57   : > { %682 = vmatprep.subr.mxu0 %v381_v43 }
  0x5a   : > { %683 = vmatpush3.msra.mxu0 %v381_v43 }
  0x5b   : > { %685 = vmatmul.mubr.msk.f32.vlgmr.msra.gmra.mrb[0].mxu0 %vm207_vm0, %v371_v44 }
 0x11f   : > { %v644_v45 = vpop.f32.mrb[0].mxu1 }
 0x120   : > { %v280_v46 = vpop.f32.mrb[1].mxu1 }
 0x12e   : > { %v686_v47 = vpop.f32.mrb[0].mxu0 }
 0x12f   : > { %v735_v49 = vadd.f32 %v686_v47, %v644_v45  ;;  %v454_v50 = vpop.f32.mrb[1].mxu0 }
 0x130   : > { %v736_v51 = vadd.f32 %v454_v50, %v280_v46 }
 0x131   : > { %v473_v52 = vadd.f32 %v735_v49, %v584_v48 }
 0x132   : > { %v472_v53 = vadd.f32 %v736_v51, %v584_v48 }
 0x133   : > { %vm475_vm1 = vcmp.ge.f32.partialorder %v473_v52, 0.0  ;;  %v477_v54 = vmul.f32 0.3, %v473_v52 }
 0x134   : > { %vm474_vm2 = vcmp.ge.f32.partialorder %v472_v53, 0.0  ;;  %v476_v55 = vmul.f32 0.3, %v472_v53 }
 0x135   : > { %v479_v56 = vsel %vm475_vm1, %v473_v52, %v477_v54 }
 0x136   : > { %481 = vst [vmem:[%s178_s4 + $0x8] sm:$0xff] %v479_v56  ;;  %v478_v57 = vsel %vm474_vm2, %v472_v53, %v476_v55 }
 0x137   : > { %480 = vst [vmem:[%s178_s4] sm:$0xff] %v478_v57 }
 0x138   : > { %835 = shalt.err (!%p832_p7)
}
 0x139   : > { %s836_s20 = scalar_lea.hbm %s1028_s9, 256  ;;  %s840_s26 = scalar_lea.hbm %s1074_s3, 512 }
 0x13a   : > { %p837_p8 = scmp.ne.s32.totalorder %s1028_s9, %s836_s20  ;;  %p841_p1 = scmp.lt.u32.totalorder %s1028_s9, %s1074_s3 }
 0x13b   : > { %p842_p0 = scmp.lt.u32.totalorder %s840_s26, %s836_s20  ;;  %p844_p6 = scmp.lt.u32.totalorder %s836_s20, %s1028_s9 }
 0x13c   : > { %p838_p11 = pnand %p837_p8, %p1085_p9 }
 0x13d   : > { %p843_p5 = por %p842_p0, %p841_p1 }
 0x13e   : > { %p839_p13 = pneg %p838_p11 }
 0x13f   : > { %p845_p10 = por %p844_p6, %p843_p5 }
 0x141   : > { %p846_p12 = pnand %p845_p10, %p839_p13 }
 0x143   : > { %849 = shalt.err (!%p846_p12)
}
 0x144   : > { %s894_s29 = smov 128   ;;  %s895_s30 = smov 8  }
 0x145   : > { %744 = dma.vmem_to_hbm [thread:$0]  (%p1085_p9), %s1023_s5, 256, %s1028_s9, %s1030_s16, %s894_s29, %s894_s29, %s895_s30  }
 0x146 PF: > { %p756_p2 = scmp.ge.s32.totalorder %s888_s15, 2  ;;  %s511_s4 = sand.u32 1, %s876_s12  }
 0x147   : > { %p1086_p3 = scmp.ne.s32.totalorder %s1079_s23, 0  ;;  %s512_s6 = scalar_lea.sflag [#allocation4], %s511_s4 }
 0x149   : > { %p751_p4 = pnand %p756_p2, %p1086_p3 }
 0x14b   : > { %871 = dma.done.wait (!%p751_p4), %s512_s6, 256  }
 0x14c   : > { %873 = vsyncadd (!%p751_p4), %s512_s6, 4294967040  ;;  %p14_p7 = scmp.ge.s32.totalorder %s941_s18, 4   ;;  %s1087_s12 = smov %s880_s13 }
 0x14d   : > { %s1088_s13 = smov %s884_s14  ;;  %s1089_s14 = smov %s952_s21 }
 0x14e   : > { %s1090_s15 = smov %s941_s18  ;;  %16 = sbr.rel (!%p14_p7) target bundleno = 4 (0x4), region = 74 }
 0x155   :  { %517 = vsyncpa [#allocation3], 1 }
 0x156   :  { %519 = vsyncpa [#allocation3 + $0x1], 1 }
 0x157   :  { %520 = vsyncpa [#allocation4], 1 }
 0x158   :  { %522 = vsyncpa [#allocation4 + $0x1], 1 }

</bundles_post_ra>
